<compile_context>
chip_gen: v7x
topology: tpu7x:2x2x1
jax: 0.10.0
libtpu: 0.0.40
codegen_flags: <defaults>
</compile_context>

<pallas_src>
import functools

import jax
import jax.numpy as jnp
from jax.experimental import pallas as pl
from jax.experimental.pallas import tpu as pltpu

LN_EPS = 1e-5  # nn.LayerNorm default


def _round_up(x, m):
    return ((x + m - 1) // m) * m


def _patch_embed_kernel(x_ref, w_ref, p_ref, o_ref):
    """(tm, K) patches @ (K, N) weight, + bias, LayerNorm, scale/shift."""
    # MXU matmul with f32 accumulation (inputs may be bf16).
    y = jnp.dot(x_ref[...], w_ref[...], preferred_element_type=jnp.float32)
    p = p_ref[...]                               # (3, N) f32: [bias, gamma, beta]
    y = y + p[0:1, :]

    # LayerNorm over the (un-padded) embedding dim, all in f32, per row.
    mean = jnp.mean(y, axis=-1, keepdims=True)
    diff = y - mean
    var = jnp.mean(diff * diff, axis=-1, keepdims=True)
    y_hat = diff * jax.lax.rsqrt(var + LN_EPS)

    o_ref[...] = (y_hat * p[1:2, :] + p[2:3, :]).astype(o_ref.dtype)


def patchify(x, size):
    # (B, H, W, C) -> (B, H//size, W//size, size*size*C); matches the torch
    # view/permute/reshape exactly (pure layout; left to XLA fusion).
    b, h, w, c = x.shape
    x = x.reshape(b, h // size, size, w // size, size, c)
    x = x.transpose(0, 1, 3, 2, 4, 5)
    return x.reshape(b, h // size, w // size, size * size * c)


@functools.partial(jax.jit, static_argnames=("window_size", "tm", "compute_dtype"))
def patch_embedding(x, weight, bias, gamma, beta, *, window_size, tm=4096,
                    compute_dtype=jnp.bfloat16):
    """x: (B, H, W, C); weight: (K, N), K = C*ws*ws; returns (B, H/ws, W/ws, N)."""
    b, h, w, c = x.shape
    hp, wp = h // window_size, w // window_size
    patches = patchify(x, window_size)                    # (B, hp, wp, K)
    k = patches.shape[-1]
    n = weight.shape[-1]
    m = b * hp * wp

    # Large row tile (amortizes ~0.35us/step grid overhead, keeps HBM DMAs
    # long), clamped for tiny M.  cdiv grid: no M padding needed; the ragged
    # last block's out-of-bounds rows are simply dropped on store.
    tm_eff = min(_round_up(tm, 8), _round_up(m, 8))
    grid_m = pl.cdiv(m, tm_eff)

    # Stage the dominant HBM streams (patches, weight) in compute_dtype
    # (default bf16); parameters stay f32 (tiny, keeps LN math exact).
    x2d = patches.reshape(m, k).astype(compute_dtype)
    w_c = weight.astype(compute_dtype)
    params = jnp.stack([bias, gamma, beta], axis=0).astype(jnp.float32)   # (3, N)

    in_bytes = jnp.dtype(compute_dtype).itemsize
    out_bytes = jnp.dtype(x.dtype).itemsize
    cost = pl.CostEstimate(
        flops=2 * m * k * n,
        transcendentals=m,                                # one rsqrt per row
        bytes_accessed=in_bytes * (m * k + k * n) + 4 * 3 * n + out_bytes * m * n,
    )

    # Honest VMEM budget: double-buffered x/out tiles, weight + params (the
    # grid-invariant blocks are DMA'd once but counted twice conservatively),
    # plus headroom for the f32 LayerNorm intermediates.
    vmem_need = (2 * tm_eff * k * in_bytes          # patch tiles (x2 buffers)
                 + 2 * tm_eff * n * out_bytes       # output tiles (x2 buffers)
                 + 2 * k * n * in_bytes             # weight
                 + 2 * 3 * n * 4                    # params
                 + 6 * tm_eff * n * 4)              # f32 LN intermediates
    vmem_limit = int(min(max(vmem_need + (4 << 20), 16 << 20), 56 << 20))

    out2d = pl.pallas_call(
        _patch_embed_kernel,
        out_shape=jax.ShapeDtypeStruct((m, n), x.dtype),
        grid_spec=pltpu.PrefetchScalarGridSpec(
            num_scalar_prefetch=0,
            grid=(grid_m,),
            in_specs=[
                pl.BlockSpec((tm_eff, k), lambda i: (i, 0)),   # patch rows
                pl.BlockSpec((k, n), lambda i: (0, 0)),        # weight (grid-invariant)
                pl.BlockSpec((3, n), lambda i: (0, 0)),        # [bias; gamma; beta]
            ],
            out_specs=pl.BlockSpec((tm_eff, n), lambda i: (i, 0)),
        ),
        compiler_params=pltpu.CompilerParams(
            dimension_semantics=("parallel",),   # M-grid shards across TCs on v7x
            vmem_limit_bytes=vmem_limit,
        ),
        cost_estimate=cost,
    )(x2d, w_c, params)

    return out2d.reshape(b, hp, wp, n)


if __name__ == "__main__":
    # Small shapes consistent with the module (channels-last input).
    B, H, W, C = 2, 16, 16, 4
    window_size = 4
    in_feats = C * window_size * window_size   # 64
    out_dim = 32

    key = jax.random.PRNGKey(0)
    kx, kw, kb = jax.random.split(key, 3)

    x = jax.random.normal(kx, (B, H, W, C), dtype=jnp.float32)

    # Deterministic parameter init (uniform like nn.Linear's default range).
    bound = 1.0 / (in_feats ** 0.5)
    weight = jax.random.uniform(kw, (in_feats, out_dim), jnp.float32, -bound, bound)
    bias = jax.random.uniform(kb, (out_dim,), jnp.float32, -bound, bound)
    gamma = jnp.ones((out_dim,), jnp.float32)   # nn.LayerNorm defaults
    beta = jnp.zeros((out_dim,), jnp.float32)

    # Pure-JAX reference.
    ref_p = patchify(x, window_size)
    ref_y = ref_p @ weight + bias
    mu = ref_y.mean(-1, keepdims=True)
    va = ((ref_y - mu) ** 2).mean(-1, keepdims=True)
    ref = (ref_y - mu) / jnp.sqrt(va + LN_EPS) * gamma + beta

    # 1) Exact-parity check with f32 staging.
    out_f32 = patch_embedding(x, weight, bias, gamma, beta,
                              window_size=window_size, compute_dtype=jnp.float32)
    jax.block_until_ready(out_f32)
    assert out_f32.shape == (B, H // window_size, W // window_size, out_dim)
    assert jnp.allclose(out_f32, ref, atol=1e-5, rtol=1e-5)

    # 2) Default production path: bf16-staged patches/weight (looser tol).
    out_bf16 = patch_embedding(x, weight, bias, gamma, beta,
                               window_size=window_size)
    jax.block_until_ready(out_bf16)
    assert out_bf16.shape == out_f32.shape
    assert jnp.allclose(out_bf16, ref, atol=5e-2, rtol=5e-2)

    # 3) Ragged-M path: tile (24) does not divide M (32) -> cdiv grid, last
    #    block's OOB rows dropped on store.
    out_rag = patch_embedding(x, weight, bias, gamma, beta,
                              window_size=window_size, tm=24,
                              compute_dtype=jnp.float32)
    jax.block_until_ready(out_rag)
    assert jnp.allclose(out_rag, ref, atol=1e-5, rtol=1e-5)

    print("KERNEL_OK")
</pallas_src>

<mosaic_0001>
module attributes {stable_mosaic.version = 11 : i64} {
  func.func @_patch_embed_kernel(%arg0: i32, %arg1: memref<32x64xf32, #tpu.memory_space<vmem>>, %arg2: memref<64x32xf32, #tpu.memory_space<vmem>>, %arg3: memref<3x32xf32, #tpu.memory_space<vmem>>, %arg4: memref<32x32xf32, #tpu.memory_space<vmem>>) attributes {dimension_semantics = [#tpu.dimension_semantics<parallel>], iteration_bounds = array<i64: 1>, scalar_prefetch = 0 : i64, scratch_operands = 0 : i64, tpu.core_type = #tpu.core_type<tc>, window_params = [{transform_indices = @transform_0, window_bounds = array<i64: 32, 64>}, {pipeline_mode = #tpu.pipeline_mode<synchronous>, transform_indices = @transform_1, window_bounds = array<i64: 64, 32>}, {pipeline_mode = #tpu.pipeline_mode<synchronous>, transform_indices = @transform_2, window_bounds = array<i64: 3, 32>}, {transform_indices = @transform_3, window_bounds = array<i64: 32, 32>}]} {
    %c0 = arith.constant 0 : index
    %c0_0 = arith.constant 0 : index
    %0 = vector.load %arg1[%c0, %c0_0] : memref<32x64xf32, #tpu.memory_space<vmem>>, vector<32x64xf32>
    %c0_1 = arith.constant 0 : index
    %c0_2 = arith.constant 0 : index
    %1 = vector.load %arg2[%c0_1, %c0_2] : memref<64x32xf32, #tpu.memory_space<vmem>>, vector<64x32xf32>
    %cst = arith.constant dense<0.000000e+00> : vector<32x32xf32>
    %2 = tpu.matmul %0, %1, %cst {dimension_numbers = #tpu.dot_dimension_numbers<[1], [0], [0], [1], [0, 0, 1, 1], [], []>} : vector<32x64xf32>, vector<64x32xf32>, vector<32x32xf32> -> vector<32x32xf32>
    %c0_3 = arith.constant 0 : index
    %c0_4 = arith.constant 0 : index
    %3 = vector.load %arg3[%c0_3, %c0_4] : memref<3x32xf32, #tpu.memory_space<vmem>>, vector<3x32xf32>
    %4 = vector.extract_strided_slice %3 {offsets = [0, 0], sizes = [1, 32], strides = [1, 1]} : vector<3x32xf32> to vector<1x32xf32>
    %5 = vector.broadcast %4 : vector<1x32xf32> to vector<32x32xf32>
    %6 = arith.addf %2, %5 : vector<32x32xf32>
    %cst_5 = arith.constant dense<0.000000e+00> : vector<32xf32>
    %7 = vector.multi_reduction <add>, %6, %cst_5 [1] : vector<32x32xf32> to vector<32xf32>
    %8 = vector.shape_cast %7 : vector<32xf32> to vector<32x1xf32>
    %cst_6 = arith.constant 3.200000e+01 : f32
    %9 = vector.broadcast %cst_6 : f32 to vector<32x1xf32>
    %10 = arith.divf %8, %9 : vector<32x1xf32>
    %11 = vector.broadcast %10 : vector<32x1xf32> to vector<32x32xf32>
    %12 = arith.subf %6, %11 : vector<32x32xf32>
    %13 = arith.mulf %12, %12 : vector<32x32xf32>
    %cst_7 = arith.constant dense<0.000000e+00> : vector<32xf32>
    %14 = vector.multi_reduction <add>, %13, %cst_7 [1] : vector<32x32xf32> to vector<32xf32>
    %15 = vector.shape_cast %14 : vector<32xf32> to vector<32x1xf32>
    %cst_8 = arith.constant 3.200000e+01 : f32
    %16 = vector.broadcast %cst_8 : f32 to vector<32x1xf32>
    %17 = arith.divf %15, %16 : vector<32x1xf32>
    %cst_9 = arith.constant 9.99999974E-6 : f32
    %18 = vector.broadcast %cst_9 : f32 to vector<32x1xf32>
    %19 = arith.addf %17, %18 : vector<32x1xf32>
    %20 = math.rsqrt %19 : vector<32x1xf32>
    %21 = vector.broadcast %20 : vector<32x1xf32> to vector<32x32xf32>
    %22 = arith.mulf %12, %21 : vector<32x32xf32>
    %23 = vector.extract_strided_slice %3 {offsets = [1, 0], sizes = [1, 32], strides = [1, 1]} : vector<3x32xf32> to vector<1x32xf32>
    %24 = vector.broadcast %23 : vector<1x32xf32> to vector<32x32xf32>
    %25 = arith.mulf %22, %24 : vector<32x32xf32>
    %26 = vector.extract_strided_slice %3 {offsets = [2, 0], sizes = [1, 32], strides = [1, 1]} : vector<3x32xf32> to vector<1x32xf32>
    %27 = vector.broadcast %26 : vector<1x32xf32> to vector<32x32xf32>
    %28 = arith.addf %25, %27 : vector<32x32xf32>
    %c0_10 = arith.constant 0 : index
    %c0_11 = arith.constant 0 : index
    %29 = vector.load %arg4[%c0_10, %c0_11] : memref<32x32xf32, #tpu.memory_space<vmem>>, vector<32x32xf32>
    tpu.vector_store %arg4[%c0_10, %c0_11], %28 {strides = array<i32>} : memref<32x32xf32, #tpu.memory_space<vmem>>, vector<32x32xf32>,
    return
  }
  func.func @transform_0(%arg0: i32) -> (i32, i32) {
    %c0_i32 = arith.constant 0 : i32
    %c0_i32_0 = arith.constant 0 : i32
    return %arg0, %c0_i32 : i32, i32
  }
  func.func @transform_1(%arg0: i32) -> (i32, i32) {
    %c0_i32 = arith.constant 0 : i32
    %c0_i32_0 = arith.constant 0 : i32
    %c0_i32_1 = arith.constant 0 : i32
    return %c0_i32, %c0_i32_0 : i32, i32
  }
  func.func @transform_2(%arg0: i32) -> (i32, i32) {
    %c0_i32 = arith.constant 0 : i32
    %c0_i32_0 = arith.constant 0 : i32
    %c0_i32_1 = arith.constant 0 : i32
    return %c0_i32, %c0_i32_0 : i32, i32
  }
  func.func @transform_3(%arg0: i32) -> (i32, i32) {
    %c0_i32 = arith.constant 0 : i32
    %c0_i32_0 = arith.constant 0 : i32
    return %arg0, %c0_i32 : i32, i32
  }
}

</mosaic_0001>

<bundles_post_ra>
// kernel: patch_embedding.1
= control target key start
LH: loop header
LB: loop body
LE: loop exit
PB: predicated region body
PF: predicated region fallthrough
CT: control target
= control target key end

     0   :  { %vm32_vm0 = vcmask 523264   ;;  %s417_s0 = inlined_call_operand.vmem [shape: f32[32,64], index: 0, kind: input, shape index: {}]   ;;  %s418_s1 = inlined_call_operand.vmem [shape: f32[64,32], index: 1, kind: input, shape index: {}]   ;;  %s419_s2 = inlined_call_operand.vmem [shape: f32[3,32], index: 2, kind: input, shape index: {}]   ;;  %s420_s3 = inlined_call_operand.hbm [shape: f32[32,32], index: 3, kind: output, shape index: {}]  }
   0x1   :  { %v19_v0 = vld [vmem:[%s418_s1] sm:$0xff]  ;;  %v20_v1 = vld [vmem:[%s418_s1 + $0x8] sm:$0xff]  ;;  %v21_v2 = vld [vmem:[%s418_s1 + $0x10] sm:$0xff] }
   0x2   :  { %v258_v3 = vpack.c.bf16 %v20_v1, %v19_v0  ;;  %v22_v4 = vld [vmem:[%s418_s1 + $0x18] sm:$0xff]  ;;  %v23_v6 = vld [vmem:[%s418_s1 + $0x20] sm:$0xff]  ;;  %v24_v7 = vld [vmem:[%s418_s1 + $0x28] sm:$0xff] }
   0x3   :  { %v262_v5 = vpack.c.bf16 %v22_v4, %v21_v2  ;;  %v15_v8 = vld [vmem:[%s417_s0] sm:$0xff]  ;;  %v17_v9 = vld [vmem:[%s417_s0 + $0x10] sm:$0xff] }
   0x4   :  { %259 = vmatprep.subr.bf16.mxu0 %v258_v3  ;;  %274 = vmatprep.subr.bf16.mxu1 %v258_v3 }
   0x5   :  { %261 = vmatpush3.bf16.msra.mxu0 %v258_v3  ;;  %278 = vmatpush3.bf16.msra.mxu1 %v258_v3 }
   0x6   :  { %8 = vsyncpa [#allocation3], 0  ;;  %263 = vmatprep.subr.bf16.mxu0 %v262_v5  ;;  %275 = vmatprep.subr.bf16.mxu1 %v262_v5  ;;  %v266_v10 = vpack.c.bf16 %v24_v7, %v23_v6  ;;  %v25_v11 = vld [vmem:[%s418_s1 + $0x30] sm:$0xff]  ;;  %v26_v12 = vld [vmem:[%s418_s1 + $0x38] sm:$0xff]  ;;  %v28_v16 = vlaneseq  ;;  %vm130_vm1 = vcmask 261120  }
   0x7   :  { %252 = vmatprep.mubr.msk.f32.mxu0 %vm32_vm0, %v15_v8  ;;  %255 = vmatprep.mubr.msk.f32.mxu1 %vm32_vm0, %v17_v9  ;;  %v270_v13 = vpack.c.bf16 %v26_v12, %v25_v11  ;;  %v16_v14 = vld [vmem:[%s417_s0 + $0x8] sm:$0xff]  ;;  %v18_v15 = vld [vmem:[%s417_s0 + $0x18] sm:$0xff]  ;;  %v386_v19 = vld [vmem:[%s419_s2] sm:$0x7]  ;;  %s317_s0 = smov [#allocation2]  }
   0x8   :  { %v380_v17 = vshrl.u32 %v28_v16, 7  ;;  %s209_s2 = sshll.u32 %s317_s0, 4  ;;  %s210_s2 = int_to_ptr.vmem [resolvable:$true] %s209_s2 }
   0x9   :  { %265 = vmatpush3.bf16.msra.mxu0 %v262_v5  ;;  %279 = vmatpush3.bf16.msra.mxu1 %v262_v5  ;;  %s293_s10 = scalar_lea.vmem %s210_s2, 512  ;;  %p298_p1 = scmp.lt.s32.totalorder %s210_s2, %s210_s2 }
   0xa   :  { %267 = vmatprep.subr.bf16.mxu0 %v266_v10  ;;  %276 = vmatprep.subr.bf16.mxu1 %v266_v10  ;;  %v30_v18 = vsub.s32 0, %v380_v17  ;;  %v186_v0 = vsub.s32 1, %v380_v17  ;;  %v194_v2 = vsub.s32 2, %v380_v17  ;;  %p294_p0 = scmp.ne.s32.totalorder %s210_s2, %s293_s10  ;;  %p299_p2 = scmp.lt.s32.totalorder %s293_s10, %s293_s10 }
   0xc   :  { %v31_v20 = vrot.slane %v386_v19, %v30_v18  ;;  %v187_v3 = vrot.slane %v386_v19, %v186_v0  ;;  %v195_v5 = vrot.slane %v386_v19, %v194_v2  ;;  %p300_p3 = por %p299_p2, %p298_p1 }
   0xd   :  { %269 = vmatpush3.bf16.msra.mxu0 %v266_v10  ;;  %280 = vmatpush3.bf16.msra.mxu1 %v266_v10 }
   0xe   :  { %271 = vmatprep.subr.bf16.mxu0 %v270_v13  ;;  %277 = vmatprep.subr.bf16.mxu1 %v270_v13  ;;  %p301_p4 = pnand %p300_p3, %p294_p0 }
  0x11   :  { %273 = vmatpush3.bf16.msra.mxu0 %v270_v13  ;;  %281 = vmatpush3.bf16.msra.mxu1 %v270_v13 }
  0x14   :  { %253 = vmatmul.mubr.msk.f32.vlgmr.msra.gmra.mrb[0].mxu0 %vm32_vm0, %v16_v14  ;;  %256 = vmatmul.mubr.msk.f32.vlgmr.msra.gmra.mrb[0].mxu1 %vm32_vm0, %v18_v15 }
  0xe7   :  { %v254_v21 = vpop.f32.mrb[0].mxu0  ;;  %v257_v22 = vpop.f32.mrb[0].mxu1 }
  0xe8   :  { %v111_v23 = vpop.f32.mrb[1].mxu0  ;;  %v121_v24 = vpop.f32.mrb[1].mxu1  ;;  %v127_v25 = vadd.f32 %v257_v22, %v31_v20  ;;  %v117_v28 = vadd.f32 %v254_v21, %v31_v20 }
  0xe9   :  { %v112_v26 = vadd.f32 %v111_v23, %v31_v20  ;;  %v122_v27 = vadd.f32 %v121_v24, %v31_v20 }
  0xea   :  { %v140_v31 = vsel %vm130_vm1, %v127_v25, 0.0  ;;  %v134_v32 = vsel %vm130_vm1, %v117_v28, 0.0 }
  0xeb   :  { %v137_v29 = vsel %vm130_vm1, %v122_v27, 0.0  ;;  %v131_v30 = vsel %vm130_vm1, %v112_v26, 0.0 }
  0xec   :  { %138 = vadd.xlane.f32.xlu1 %v137_v29  ;;  %132 = vadd.xlane.f32.xlu0 %v131_v30 }
  0xf0   :  { %141 = vadd.xlane.f32.xlu1 %v140_v31  ;;  %135 = vadd.xlane.f32.xlu0 %v134_v32 }
 0x179   :  { %v139_v33 = vpop.xlane.xlu1 %138  ;;  %v133_v34 = vpop.xlane.xlu0 %132 }
 0x17a   :  { %v146_v35 = vmul.f32 0.03125, %v139_v33  ;;  %v144_v36 = vmul.f32 0.03125, %v133_v34 }
 0x17c   :  { %v150_v37 = vsub.f32 %v122_v27, %v146_v35  ;;  %v148_v38 = vsub.f32 %v112_v26, %v144_v36 }
 0x17d   :  { %v142_v39 = vpop.xlane.xlu1 %141  ;;  %v136_v40 = vpop.xlane.xlu0 %135 }
 0x17e   :  { %v147_v41 = vmul.f32 0.03125, %v142_v39  ;;  %v145_v42 = vmul.f32 0.03125, %v136_v40  ;;  %v152_v43 = vmul.f32 %v148_v38, %v148_v38  ;;  %v154_v47 = vmul.f32 %v150_v37, %v150_v37 }
 0x180   :  { %v151_v44 = vsub.f32 %v127_v25, %v147_v41  ;;  %v149_v45 = vsub.f32 %v117_v28, %v145_v42  ;;  %v156_v46 = vsel %vm130_vm1, %v152_v43, 0.0  ;;  %v162_v49 = vsel %vm130_vm1, %v154_v47, 0.0 }
 0x181   :  { %157 = vadd.xlane.f32.xlu0 %v156_v46 }
 0x182   :  { %v153_v48 = vmul.f32 %v149_v45, %v149_v45  ;;  %v155_v51 = vmul.f32 %v151_v44, %v151_v44 }
 0x184   :  { %v159_v50 = vsel %vm130_vm1, %v153_v48, 0.0  ;;  %v165_v52 = vsel %vm130_vm1, %v155_v51, 0.0 }
 0x185   :  { %163 = vadd.xlane.f32.xlu0 %v162_v49  ;;  %160 = vadd.xlane.f32.xlu1 %v159_v50 }
 0x189   :  { %166 = vadd.xlane.f32.xlu1 %v165_v52 }
 0x20e   :  { %v158_v53 = vpop.xlane.xlu0 %157 }
 0x20f   :  { %v168_v54 = vmul.f32 0.03125, %v158_v53 }
 0x211   :  { %v172_v55 = vadd.f32 1e-05, %v168_v54 }
 0x212   :  { %v161_v56 = vpop.xlane.xlu1 %160  ;;  %v164_v57 = vpop.xlane.xlu0 %163 }
 0x213   :  { %285 = vrsqrt.f32 %v172_v55  ;;  %v169_v58 = vmul.f32 0.03125, %v161_v56  ;;  %v170_v59 = vmul.f32 0.03125, %v164_v57 }
 0x215   :  { %v173_v60 = vadd.f32 1e-05, %v169_v58  ;;  %v174_v61 = vadd.f32 1e-05, %v170_v59 }
 0x216   :  { %v167_v62 = vpop.xlane.xlu1 %166 }
 0x217   :  { %287 = vrsqrt.f32 %v173_v60  ;;  %v171_v63 = vmul.f32 0.03125, %v167_v62 }
 0x218   :  { %289 = vrsqrt.f32 %v174_v61 }
 0x219   :  { %v175_v1 = vadd.f32 1e-05, %v171_v63 }
 0x21b   :  { %291 = vrsqrt.f32 %v175_v1 }
 0x21d   :  { %v286_v4 = vpop.eup %285 }
 0x21e   :  { %v180_v6 = vmul.f32 %v286_v4, %v148_v38 }
 0x220   :  { %v188_v7 = vmul.f32 %v187_v3, %v180_v6 }
 0x221   :  { %v288_v8 = vpop.eup %287 }
 0x222   :  { %v290_v9 = vpop.eup %289  ;;  %v196_v10 = vadd.f32 %v195_v5, %v188_v7  ;;  %v181_v11 = vmul.f32 %v288_v8, %v149_v45 }
 0x223   :  { %v182_v12 = vmul.f32 %v290_v9, %v150_v37 }
 0x224   :  { %200 = vst.msk [vmem:[#allocation2] sm:$0xff] %vm130_vm1, %v196_v10  ;;  %v189_v13 = vmul.f32 %v187_v3, %v181_v11 }
 0x225   :  { %v292_v14 = vpop.eup %291  ;;  %v190_v15 = vmul.f32 %v187_v3, %v182_v12 }
 0x226   :  { %v197_v16 = vadd.f32 %v195_v5, %v189_v13  ;;  %v183_v17 = vmul.f32 %v292_v14, %v151_v44 }
 0x227   :  { %v198_v18 = vadd.f32 %v195_v5, %v190_v15 }
 0x228   :  { %201 = vst.msk [vmem:[#allocation2 + $0x8] sm:$0xff] %vm130_vm1, %v197_v16  ;;  %v191_v19 = vmul.f32 %v187_v3, %v183_v17 }
 0x229   :  { %202 = vst.msk [vmem:[#allocation2 + $0x10] sm:$0xff] %vm130_vm1, %v198_v18 }
 0x22a   :  { %v199_v20 = vadd.f32 %v195_v5, %v191_v19 }
 0x22c   :  { %203 = vst.msk [vmem:[#allocation2 + $0x18] sm:$0xff] %vm130_vm1, %v199_v20 }
 0x22d   :  { %304 = shalt.err (!%p301_p4)
}
 0x22e   :  { %s305_s13 = scalar_lea.hbm %s420_s3, 512 }
 0x22f   :  { %p306_p5 = scmp.ne.s32.totalorder %s420_s3, %s305_s13  ;;  %p309_p6 = scmp.lt.u32.totalorder %s305_s13, %s420_s3 }
 0x231   :  { %p311_p7 = pnand %p309_p6, %p306_p5 }
 0x233   :  { %314 = shalt.err (!%p311_p7)
}
 0x234   :  { %s318_s18 = smov 128   ;;  %s319_s19 = smov 8  }
 0x235   :  { %215 = dma.vmem_to_hbm [thread:$0]  %s210_s2, 512, %s420_s3, [#allocation3], %s318_s18, %s318_s18, %s319_s19  }
 0x236   :  { %315 = dma.done.wait [#allocation3], 512  }
 0x237   :  { %316 = vsyncadd [#allocation3], 4294966784 }
 0x238   :  { %219 = vsyncpa [#allocation3], 1 }

</bundles_post_ra>
